<compile_context>
chip_gen: v5e
topology: v5e:2x2
jax: 0.10.0
libtpu: 0.0.40
codegen_flags: <defaults>
</compile_context>

<pallas_src>
from functools import partial
import math

import jax
import jax.numpy as jnp
from jax import lax
from jax.experimental import pallas as pl
from jax.experimental.pallas import tpu as pltpu


_LN_EPS = 1e-5
# Large-negative additive key mask (equivalent to -inf for any query row with
# at least one unmasked key, which matches PyTorch's key_padding_mask use).
_MASK_NEG = -1e30


def _encoder_layer_kernel(
    x_ref, bias_ref,
    wqkv_ref, bqkv_ref, wo_ref, bo_ref, g1_ref, be1_ref,
    w1_ref, b1_ref, w2_ref, b2_ref, g2_ref, be2_ref,
    out_ref, *, nhead: int,
):
    x = x_ref[0].astype(jnp.float32)          # (S, D)
    bias = bias_ref[0].astype(jnp.float32)    # (1, S) additive key-pad mask

    S, D = x.shape
    hd = D // nhead
    scale = 1.0 / math.sqrt(hd)

    # ---------------- multi-head self-attention ----------------
    qkv = jnp.dot(x, wqkv_ref[...], preferred_element_type=jnp.float32)
    qkv = qkv + bqkv_ref[...]                 # (S, 3D)
    q = qkv[:, 0:D]
    k = qkv[:, D:2 * D]
    v = qkv[:, 2 * D:3 * D]

    ctx_parts = []
    for h in range(nhead):                    # static unroll over heads
        sl = slice(h * hd, (h + 1) * hd)
        qh = q[:, sl]                         # (S, hd)
        kh = k[:, sl]
        vh = v[:, sl]
        # Gram-style contraction (contract feature dim of both) -> no .T.
        s = lax.dot_general(qh, kh, (((1,), (1,)), ((), ())),
                            preferred_element_type=jnp.float32)
        s = s * scale + bias                  # (S, S) + (1, S) broadcast
        m = jnp.max(s, axis=-1, keepdims=True)
        p = jnp.exp(s - m)
        denom = jnp.sum(p, axis=-1, keepdims=True)
        a = p / denom
        ctx_parts.append(jnp.dot(a, vh, preferred_element_type=jnp.float32))
    ctx = jnp.concatenate(ctx_parts, axis=-1)  # (S, D)

    attn = jnp.dot(ctx, wo_ref[...], preferred_element_type=jnp.float32)
    attn = attn + bo_ref[...]

    # ---------------- residual + LayerNorm 1 ----------------
    y = x + attn
    mu = jnp.mean(y, axis=-1, keepdims=True)
    d = y - mu
    var = jnp.mean(d * d, axis=-1, keepdims=True)
    y = d * lax.rsqrt(var + _LN_EPS) * g1_ref[...] + be1_ref[...]

    # ---------------- feed-forward (ReLU) ----------------
    h1 = jnp.dot(y, w1_ref[...], preferred_element_type=jnp.float32)
    h1 = jnp.maximum(h1 + b1_ref[...], 0.0)
    ff = jnp.dot(h1, w2_ref[...], preferred_element_type=jnp.float32)
    ff = ff + b2_ref[...]

    # ---------------- residual + LayerNorm 2 ----------------
    z = y + ff
    mu2 = jnp.mean(z, axis=-1, keepdims=True)
    d2 = z - mu2
    var2 = jnp.mean(d2 * d2, axis=-1, keepdims=True)
    z = d2 * lax.rsqrt(var2 + _LN_EPS) * g2_ref[...] + be2_ref[...]

    out_ref[0] = z.astype(out_ref.dtype)


def _encoder_layer(x, bias, p, nhead):
    B, S, D = x.shape
    F = p['w1'].shape[1]

    full2 = lambda b: (0, 0)
    per_batch3 = lambda b: (b, 0, 0)

    return pl.pallas_call(
        partial(_encoder_layer_kernel, nhead=nhead),
        out_shape=jax.ShapeDtypeStruct((B, S, D), jnp.float32),
        grid=(B,),
        in_specs=[
            pl.BlockSpec((1, S, D), per_batch3),      # src slab (one batch)
            pl.BlockSpec((1, 1, S), per_batch3),      # additive key mask
            pl.BlockSpec((D, 3 * D), full2),          # W_qkv (x @ W layout)
            pl.BlockSpec((1, 3 * D), full2),          # b_qkv
            pl.BlockSpec((D, D), full2),              # W_out
            pl.BlockSpec((1, D), full2),              # b_out
            pl.BlockSpec((1, D), full2),              # ln1 gamma
            pl.BlockSpec((1, D), full2),              # ln1 beta
            pl.BlockSpec((D, F), full2),              # W_ff1
            pl.BlockSpec((1, F), full2),              # b_ff1
            pl.BlockSpec((F, D), full2),              # W_ff2
            pl.BlockSpec((1, D), full2),              # b_ff2
            pl.BlockSpec((1, D), full2),              # ln2 gamma
            pl.BlockSpec((1, D), full2),              # ln2 beta
        ],
        out_specs=pl.BlockSpec((1, S, D), per_batch3),
        compiler_params=pltpu.CompilerParams(
            dimension_semantics=("parallel",)),
    )(x, bias, p['w_qkv'], p['b_qkv'], p['w_o'], p['b_o'],
      p['g1'], p['be1'], p['w1'], p['b1'], p['w2'], p['b2'],
      p['g2'], p['be2'])


def transformer_encoder(src, src_key_padding_mask, layer_params, nhead):
    """Pallas implementation of TransformerEncoder.forward (inference mode).

    src: (B, S, d_model) float; src_key_padding_mask: (B, S) bool, True = pad.
    layer_params: list of per-layer dicts with weights in "x @ W" orientation.
    """
    B, S, D = src.shape
    bias = jnp.where(src_key_padding_mask, _MASK_NEG, 0.0)
    bias = bias.astype(jnp.float32).reshape(B, 1, S)
    x = src.astype(jnp.float32)
    for p in layer_params:
        x = _encoder_layer(x, bias, p, nhead)
    return x


# ----------------------------- reference ---------------------------------
def _layer_norm_ref(x, g, b):
    mu = jnp.mean(x, axis=-1, keepdims=True)
    var = jnp.mean((x - mu) ** 2, axis=-1, keepdims=True)
    return (x - mu) / jnp.sqrt(var + _LN_EPS) * g + b


def _reference_encoder(src, src_key_padding_mask, layer_params, nhead):
    hp = jax.lax.Precision.HIGHEST
    B, S, D = src.shape
    hd = D // nhead
    scale = 1.0 / math.sqrt(hd)
    bias = jnp.where(src_key_padding_mask, _MASK_NEG, 0.0).astype(jnp.float32)
    bias = bias[:, None, None, :]                     # (B,1,1,S)
    x = src.astype(jnp.float32)
    for p in layer_params:
        qkv = jnp.einsum('bsd,df->bsf', x, p['w_qkv'], precision=hp) + p['b_qkv']
        q = qkv[..., 0:D].reshape(B, S, nhead, hd)
        k = qkv[..., D:2 * D].reshape(B, S, nhead, hd)
        v = qkv[..., 2 * D:3 * D].reshape(B, S, nhead, hd)
        s = jnp.einsum('bqhd,bkhd->bhqk', q, k, precision=hp) * scale + bias
        a = jax.nn.softmax(s, axis=-1)
        ctx = jnp.einsum('bhqk,bkhd->bqhd', a, v, precision=hp).reshape(B, S, D)
        attn = jnp.einsum('bsd,df->bsf', ctx, p['w_o'], precision=hp) + p['b_o']
        x = _layer_norm_ref(x + attn, p['g1'][0], p['be1'][0])
        h = jax.nn.relu(
            jnp.einsum('bsd,df->bsf', x, p['w1'], precision=hp) + p['b1'])
        ff = jnp.einsum('bsf,fd->bsd', h, p['w2'], precision=hp) + p['b2']
        x = _layer_norm_ref(x + ff, p['g2'][0], p['be2'][0])
    return x


def _init_layer_params(key, d_model, dim_feedforward):
    ks = jax.random.split(key, 12)
    s_d = 1.0 / math.sqrt(d_model)
    s_f = 1.0 / math.sqrt(dim_feedforward)
    f32 = jnp.float32
    return {
        'w_qkv': jax.random.normal(ks[0], (d_model, 3 * d_model), f32) * s_d,
        'b_qkv': jax.random.normal(ks[1], (1, 3 * d_model), f32) * 0.02,
        'w_o':   jax.random.normal(ks[2], (d_model, d_model), f32) * s_d,
        'b_o':   jax.random.normal(ks[3], (1, d_model), f32) * 0.02,
        'g1':    1.0 + 0.1 * jax.random.normal(ks[4], (1, d_model), f32),
        'be1':   0.1 * jax.random.normal(ks[5], (1, d_model), f32),
        'w1':    jax.random.normal(ks[6], (d_model, dim_feedforward), f32) * s_d,
        'b1':    jax.random.normal(ks[7], (1, dim_feedforward), f32) * 0.02,
        'w2':    jax.random.normal(ks[8], (dim_feedforward, d_model), f32) * s_f,
        'b2':    jax.random.normal(ks[9], (1, d_model), f32) * 0.02,
        'g2':    1.0 + 0.1 * jax.random.normal(ks[10], (1, d_model), f32),
        'be2':   0.1 * jax.random.normal(ks[11], (1, d_model), f32),
    }


if __name__ == "__main__":
    # Small shapes consistent with the module:
    # batch=2, seq=8, d_model=32, nhead=4, num_layers=2, dim_feedforward=64.
    # (max_nodes is a constructor arg unused by the forward pass.)
    B, S = 2, 8
    d_model, nhead, num_layers, dim_feedforward = 32, 4, 2, 64

    key = jax.random.PRNGKey(0)
    k_src, *k_layers = jax.random.split(key, num_layers + 1)
    src = jax.random.normal(k_src, (B, S, d_model), jnp.float32)

    # PyTorch convention: True = padded key position (ignored in attention).
    lengths = jnp.array([S, 5])
    src_key_padding_mask = jnp.arange(S)[None, :] >= lengths[:, None]

    params = [_init_layer_params(k, d_model, dim_feedforward) for k in k_layers]

    out = transformer_encoder(src, src_key_padding_mask, params, nhead)
    out = jax.block_until_ready(out)

    ref = _reference_encoder(src, src_key_padding_mask, params, nhead)
    assert out.shape == (B, S, d_model)
    max_diff = jnp.max(jnp.abs(out - ref))
    assert jnp.allclose(out, ref, atol=2e-3, rtol=2e-3), (
        f"mismatch vs reference: max abs diff = {max_diff}")

    print("KERNEL_OK")
</pallas_src>

<mosaic_0001>
module attributes {stable_mosaic.version = 11 : i64} {
  func.func @_encoder_layer_kernel(%arg0: i32, %arg1: memref<1x8x32xf32, #tpu.memory_space<vmem>>, %arg2: memref<1x1x8xf32, #tpu.memory_space<vmem>>, %arg3: memref<32x96xf32, #tpu.memory_space<vmem>>, %arg4: memref<1x96xf32, #tpu.memory_space<vmem>>, %arg5: memref<32x32xf32, #tpu.memory_space<vmem>>, %arg6: memref<1x32xf32, #tpu.memory_space<vmem>>, %arg7: memref<1x32xf32, #tpu.memory_space<vmem>>, %arg8: memref<1x32xf32, #tpu.memory_space<vmem>>, %arg9: memref<32x64xf32, #tpu.memory_space<vmem>>, %arg10: memref<1x64xf32, #tpu.memory_space<vmem>>, %arg11: memref<64x32xf32, #tpu.memory_space<vmem>>, %arg12: memref<1x32xf32, #tpu.memory_space<vmem>>, %arg13: memref<1x32xf32, #tpu.memory_space<vmem>>, %arg14: memref<1x32xf32, #tpu.memory_space<vmem>>, %arg15: memref<1x8x32xf32, #tpu.memory_space<vmem>>) attributes {dimension_semantics = [#tpu.dimension_semantics<parallel>], iteration_bounds = array<i64: 2>, scalar_prefetch = 0 : i64, scratch_operands = 0 : i64, tpu.core_type = #tpu.core_type<tc>, window_params = [{transform_indices = @transform_0, window_bounds = array<i64: 1, 8, 32>}, {transform_indices = @transform_1, window_bounds = array<i64: 1, 1, 8>}, {pipeline_mode = #tpu.pipeline_mode<synchronous>, transform_indices = @transform_2, window_bounds = array<i64: 32, 96>}, {pipeline_mode = #tpu.pipeline_mode<synchronous>, transform_indices = @transform_3, window_bounds = array<i64: 1, 96>}, {pipeline_mode = #tpu.pipeline_mode<synchronous>, transform_indices = @transform_4, window_bounds = array<i64: 32, 32>}, {pipeline_mode = #tpu.pipeline_mode<synchronous>, transform_indices = @transform_5, window_bounds = array<i64: 1, 32>}, {pipeline_mode = #tpu.pipeline_mode<synchronous>, transform_indices = @transform_6, window_bounds = array<i64: 1, 32>}, {pipeline_mode = #tpu.pipeline_mode<synchronous>, transform_indices = @transform_7, window_bounds = array<i64: 1, 32>}, {pipeline_mode = #tpu.pipeline_mode<synchronous>, transform_indices = @transform_8, window_bounds = array<i64: 32, 64>}, {pipeline_mode = #tpu.pipeline_mode<synchronous>, transform_indices = @transform_9, window_bounds = array<i64: 1, 64>}, {pipeline_mode = #tpu.pipeline_mode<synchronous>, transform_indices = @transform_10, window_bounds = array<i64: 64, 32>}, {pipeline_mode = #tpu.pipeline_mode<synchronous>, transform_indices = @transform_11, window_bounds = array<i64: 1, 32>}, {pipeline_mode = #tpu.pipeline_mode<synchronous>, transform_indices = @transform_12, window_bounds = array<i64: 1, 32>}, {pipeline_mode = #tpu.pipeline_mode<synchronous>, transform_indices = @transform_13, window_bounds = array<i64: 1, 32>}, {transform_indices = @transform_14, window_bounds = array<i64: 1, 8, 32>}]} {
    %c0 = arith.constant 0 : index
    %c0_0 = arith.constant 0 : index
    %c0_1 = arith.constant 0 : index
    %0 = vector.load %arg1[%c0, %c0_0, %c0_1] : memref<1x8x32xf32, #tpu.memory_space<vmem>>, vector<1x8x32xf32>
    %1 = vector.shape_cast %0 : vector<1x8x32xf32> to vector<8x32xf32>
    %c0_2 = arith.constant 0 : index
    %c0_3 = arith.constant 0 : index
    %c0_4 = arith.constant 0 : index
    %2 = vector.load %arg2[%c0_2, %c0_3, %c0_4] : memref<1x1x8xf32, #tpu.memory_space<vmem>>, vector<1x1x8xf32>
    %3 = vector.shape_cast %2 : vector<1x1x8xf32> to vector<1x8xf32>
    %c0_5 = arith.constant 0 : index
    %c0_6 = arith.constant 0 : index
    %4 = vector.load %arg3[%c0_5, %c0_6] : memref<32x96xf32, #tpu.memory_space<vmem>>, vector<32x96xf32>
    %cst = arith.constant dense<0.000000e+00> : vector<8x96xf32>
    %5 = tpu.matmul %1, %4, %cst {dimension_numbers = #tpu.dot_dimension_numbers<[1], [0], [0], [1], [0, 0, 1, 1], [], []>} : vector<8x32xf32>, vector<32x96xf32>, vector<8x96xf32> -> vector<8x96xf32>
    %c0_7 = arith.constant 0 : index
    %c0_8 = arith.constant 0 : index
    %6 = vector.load %arg4[%c0_7, %c0_8] : memref<1x96xf32, #tpu.memory_space<vmem>>, vector<1x96xf32>
    %7 = vector.broadcast %6 : vector<1x96xf32> to vector<8x96xf32>
    %8 = arith.addf %5, %7 : vector<8x96xf32>
    %9 = vector.extract_strided_slice %8 {offsets = [0, 0], sizes = [8, 32], strides = [1, 1]} : vector<8x96xf32> to vector<8x32xf32>
    %10 = vector.extract_strided_slice %8 {offsets = [0, 32], sizes = [8, 32], strides = [1, 1]} : vector<8x96xf32> to vector<8x32xf32>
    %11 = vector.extract_strided_slice %8 {offsets = [0, 64], sizes = [8, 32], strides = [1, 1]} : vector<8x96xf32> to vector<8x32xf32>
    %12 = vector.extract_strided_slice %9 {offsets = [0, 0], sizes = [8, 8], strides = [1, 1]} : vector<8x32xf32> to vector<8x8xf32>
    %13 = vector.extract_strided_slice %10 {offsets = [0, 0], sizes = [8, 8], strides = [1, 1]} : vector<8x32xf32> to vector<8x8xf32>
    %14 = vector.extract_strided_slice %11 {offsets = [0, 0], sizes = [8, 8], strides = [1, 1]} : vector<8x32xf32> to vector<8x8xf32>
    %cst_9 = arith.constant dense<0.000000e+00> : vector<8x8xf32>
    %15 = tpu.matmul %12, %13, %cst_9 {dimension_numbers = #tpu.dot_dimension_numbers<[1], [1], [0], [0], [0, 0, 1, 0], [], []>} : vector<8x8xf32>, vector<8x8xf32>, vector<8x8xf32> -> vector<8x8xf32>
    %cst_10 = arith.constant 0.353553385 : f32
    %16 = vector.broadcast %cst_10 : f32 to vector<8x8xf32>
    %17 = arith.mulf %15, %16 : vector<8x8xf32>
    %18 = vector.broadcast %3 : vector<1x8xf32> to vector<8x8xf32>
    %19 = arith.addf %17, %18 : vector<8x8xf32>
    %cst_11 = arith.constant dense<0xFF800000> : vector<8xf32>
    %20 = vector.multi_reduction <maximumf>, %19, %cst_11 [1] : vector<8x8xf32> to vector<8xf32>
    %21 = vector.shape_cast %20 : vector<8xf32> to vector<8x1xf32>
    %22 = vector.broadcast %21 : vector<8x1xf32> to vector<8x8xf32>
    %23 = arith.subf %19, %22 : vector<8x8xf32>
    %24 = math.exp %23 : vector<8x8xf32>
    %cst_12 = arith.constant dense<0.000000e+00> : vector<8xf32>
    %25 = vector.multi_reduction <add>, %24, %cst_12 [1] : vector<8x8xf32> to vector<8xf32>
    %26 = vector.shape_cast %25 : vector<8xf32> to vector<8x1xf32>
    %27 = vector.broadcast %26 : vector<8x1xf32> to vector<8x8xf32>
    %28 = arith.divf %24, %27 : vector<8x8xf32>
    %cst_13 = arith.constant dense<0.000000e+00> : vector<8x8xf32>
    %29 = tpu.matmul %28, %14, %cst_13 {dimension_numbers = #tpu.dot_dimension_numbers<[1], [0], [0], [1], [0, 0, 1, 1], [], []>} : vector<8x8xf32>, vector<8x8xf32>, vector<8x8xf32> -> vector<8x8xf32>
    %30 = vector.extract_strided_slice %9 {offsets = [0, 8], sizes = [8, 8], strides = [1, 1]} : vector<8x32xf32> to vector<8x8xf32>
    %31 = vector.extract_strided_slice %10 {offsets = [0, 8], sizes = [8, 8], strides = [1, 1]} : vector<8x32xf32> to vector<8x8xf32>
    %32 = vector.extract_strided_slice %11 {offsets = [0, 8], sizes = [8, 8], strides = [1, 1]} : vector<8x32xf32> to vector<8x8xf32>
    %cst_14 = arith.constant dense<0.000000e+00> : vector<8x8xf32>
    %33 = tpu.matmul %30, %31, %cst_14 {dimension_numbers = #tpu.dot_dimension_numbers<[1], [1], [0], [0], [0, 0, 1, 0], [], []>} : vector<8x8xf32>, vector<8x8xf32>, vector<8x8xf32> -> vector<8x8xf32>
    %cst_15 = arith.constant 0.353553385 : f32
    %34 = vector.broadcast %cst_15 : f32 to vector<8x8xf32>
    %35 = arith.mulf %33, %34 : vector<8x8xf32>
    %36 = vector.broadcast %3 : vector<1x8xf32> to vector<8x8xf32>
    %37 = arith.addf %35, %36 : vector<8x8xf32>
    %cst_16 = arith.constant dense<0xFF800000> : vector<8xf32>
    %38 = vector.multi_reduction <maximumf>, %37, %cst_16 [1] : vector<8x8xf32> to vector<8xf32>
    %39 = vector.shape_cast %38 : vector<8xf32> to vector<8x1xf32>
    %40 = vector.broadcast %39 : vector<8x1xf32> to vector<8x8xf32>
    %41 = arith.subf %37, %40 : vector<8x8xf32>
    %42 = math.exp %41 : vector<8x8xf32>
    %cst_17 = arith.constant dense<0.000000e+00> : vector<8xf32>
    %43 = vector.multi_reduction <add>, %42, %cst_17 [1] : vector<8x8xf32> to vector<8xf32>
    %44 = vector.shape_cast %43 : vector<8xf32> to vector<8x1xf32>
    %45 = vector.broadcast %44 : vector<8x1xf32> to vector<8x8xf32>
    %46 = arith.divf %42, %45 : vector<8x8xf32>
    %cst_18 = arith.constant dense<0.000000e+00> : vector<8x8xf32>
    %47 = tpu.matmul %46, %32, %cst_18 {dimension_numbers = #tpu.dot_dimension_numbers<[1], [0], [0], [1], [0, 0, 1, 1], [], []>} : vector<8x8xf32>, vector<8x8xf32>, vector<8x8xf32> -> vector<8x8xf32>
    %48 = vector.extract_strided_slice %9 {offsets = [0, 16], sizes = [8, 8], strides = [1, 1]} : vector<8x32xf32> to vector<8x8xf32>
    %49 = vector.extract_strided_slice %10 {offsets = [0, 16], sizes = [8, 8], strides = [1, 1]} : vector<8x32xf32> to vector<8x8xf32>
    %50 = vector.extract_strided_slice %11 {offsets = [0, 16], sizes = [8, 8], strides = [1, 1]} : vector<8x32xf32> to vector<8x8xf32>
    %cst_19 = arith.constant dense<0.000000e+00> : vector<8x8xf32>
    %51 = tpu.matmul %48, %49, %cst_19 {dimension_numbers = #tpu.dot_dimension_numbers<[1], [1], [0], [0], [0, 0, 1, 0], [], []>} : vector<8x8xf32>, vector<8x8xf32>, vector<8x8xf32> -> vector<8x8xf32>
    %cst_20 = arith.constant 0.353553385 : f32
    %52 = vector.broadcast %cst_20 : f32 to vector<8x8xf32>
    %53 = arith.mulf %51, %52 : vector<8x8xf32>
    %54 = vector.broadcast %3 : vector<1x8xf32> to vector<8x8xf32>
    %55 = arith.addf %53, %54 : vector<8x8xf32>
    %cst_21 = arith.constant dense<0xFF800000> : vector<8xf32>
    %56 = vector.multi_reduction <maximumf>, %55, %cst_21 [1] : vector<8x8xf32> to vector<8xf32>
    %57 = vector.shape_cast %56 : vector<8xf32> to vector<8x1xf32>
    %58 = vector.broadcast %57 : vector<8x1xf32> to vector<8x8xf32>
    %59 = arith.subf %55, %58 : vector<8x8xf32>
    %60 = math.exp %59 : vector<8x8xf32>
    %cst_22 = arith.constant dense<0.000000e+00> : vector<8xf32>
    %61 = vector.multi_reduction <add>, %60, %cst_22 [1] : vector<8x8xf32> to vector<8xf32>
    %62 = vector.shape_cast %61 : vector<8xf32> to vector<8x1xf32>
    %63 = vector.broadcast %62 : vector<8x1xf32> to vector<8x8xf32>
    %64 = arith.divf %60, %63 : vector<8x8xf32>
    %cst_23 = arith.constant dense<0.000000e+00> : vector<8x8xf32>
    %65 = tpu.matmul %64, %50, %cst_23 {dimension_numbers = #tpu.dot_dimension_numbers<[1], [0], [0], [1], [0, 0, 1, 1], [], []>} : vector<8x8xf32>, vector<8x8xf32>, vector<8x8xf32> -> vector<8x8xf32>
    %66 = vector.extract_strided_slice %9 {offsets = [0, 24], sizes = [8, 8], strides = [1, 1]} : vector<8x32xf32> to vector<8x8xf32>
    %67 = vector.extract_strided_slice %10 {offsets = [0, 24], sizes = [8, 8], strides = [1, 1]} : vector<8x32xf32> to vector<8x8xf32>
    %68 = vector.extract_strided_slice %11 {offsets = [0, 24], sizes = [8, 8], strides = [1, 1]} : vector<8x32xf32> to vector<8x8xf32>
    %cst_24 = arith.constant dense<0.000000e+00> : vector<8x8xf32>
    %69 = tpu.matmul %66, %67, %cst_24 {dimension_numbers = #tpu.dot_dimension_numbers<[1], [1], [0], [0], [0, 0, 1, 0], [], []>} : vector<8x8xf32>, vector<8x8xf32>, vector<8x8xf32> -> vector<8x8xf32>
    %cst_25 = arith.constant 0.353553385 : f32
    %70 = vector.broadcast %cst_25 : f32 to vector<8x8xf32>
    %71 = arith.mulf %69, %70 : vector<8x8xf32>
    %72 = vector.broadcast %3 : vector<1x8xf32> to vector<8x8xf32>
    %73 = arith.addf %71, %72 : vector<8x8xf32>
    %cst_26 = arith.constant dense<0xFF800000> : vector<8xf32>
    %74 = vector.multi_reduction <maximumf>, %73, %cst_26 [1] : vector<8x8xf32> to vector<8xf32>
    %75 = vector.shape_cast %74 : vector<8xf32> to vector<8x1xf32>
    %76 = vector.broadcast %75 : vector<8x1xf32> to vector<8x8xf32>
    %77 = arith.subf %73, %76 : vector<8x8xf32>
    %78 = math.exp %77 : vector<8x8xf32>
    %cst_27 = arith.constant dense<0.000000e+00> : vector<8xf32>
    %79 = vector.multi_reduction <add>, %78, %cst_27 [1] : vector<8x8xf32> to vector<8xf32>
    %80 = vector.shape_cast %79 : vector<8xf32> to vector<8x1xf32>
    %81 = vector.broadcast %80 : vector<8x1xf32> to vector<8x8xf32>
    %82 = arith.divf %78, %81 : vector<8x8xf32>
    %cst_28 = arith.constant dense<0.000000e+00> : vector<8x8xf32>
    %83 = tpu.matmul %82, %68, %cst_28 {dimension_numbers = #tpu.dot_dimension_numbers<[1], [0], [0], [1], [0, 0, 1, 1], [], []>} : vector<8x8xf32>, vector<8x8xf32>, vector<8x8xf32> -> vector<8x8xf32>
    %84 = tpu.concatenate %29, %47, %65, %83 in 1 : vector<8x8xf32>, vector<8x8xf32>, vector<8x8xf32>, vector<8x8xf32> -> vector<8x32xf32>
    %c0_29 = arith.constant 0 : index
    %c0_30 = arith.constant 0 : index
    %85 = vector.load %arg5[%c0_29, %c0_30] : memref<32x32xf32, #tpu.memory_space<vmem>>, vector<32x32xf32>
    %cst_31 = arith.constant dense<0.000000e+00> : vector<8x32xf32>
    %86 = tpu.matmul %84, %85, %cst_31 {dimension_numbers = #tpu.dot_dimension_numbers<[1], [0], [0], [1], [0, 0, 1, 1], [], []>} : vector<8x32xf32>, vector<32x32xf32>, vector<8x32xf32> -> vector<8x32xf32>
    %c0_32 = arith.constant 0 : index
    %c0_33 = arith.constant 0 : index
    %87 = vector.load %arg6[%c0_32, %c0_33] : memref<1x32xf32, #tpu.memory_space<vmem>>, vector<1x32xf32>
    %88 = vector.broadcast %87 : vector<1x32xf32> to vector<8x32xf32>
    %89 = arith.addf %86, %88 : vector<8x32xf32>
    %90 = arith.addf %1, %89 : vector<8x32xf32>
    %cst_34 = arith.constant dense<0.000000e+00> : vector<8xf32>
    %91 = vector.multi_reduction <add>, %90, %cst_34 [1] : vector<8x32xf32> to vector<8xf32>
    %92 = vector.shape_cast %91 : vector<8xf32> to vector<8x1xf32>
    %cst_35 = arith.constant 3.200000e+01 : f32
    %93 = vector.broadcast %cst_35 : f32 to vector<8x1xf32>
    %94 = arith.divf %92, %93 : vector<8x1xf32>
    %95 = vector.broadcast %94 : vector<8x1xf32> to vector<8x32xf32>
    %96 = arith.subf %90, %95 : vector<8x32xf32>
    %97 = arith.mulf %96, %96 : vector<8x32xf32>
    %cst_36 = arith.constant dense<0.000000e+00> : vector<8xf32>
    %98 = vector.multi_reduction <add>, %97, %cst_36 [1] : vector<8x32xf32> to vector<8xf32>
    %99 = vector.shape_cast %98 : vector<8xf32> to vector<8x1xf32>
    %cst_37 = arith.constant 3.200000e+01 : f32
    %100 = vector.broadcast %cst_37 : f32 to vector<8x1xf32>
    %101 = arith.divf %99, %100 : vector<8x1xf32>
    %cst_38 = arith.constant 9.99999974E-6 : f32
    %102 = vector.broadcast %cst_38 : f32 to vector<8x1xf32>
    %103 = arith.addf %101, %102 : vector<8x1xf32>
    %104 = math.rsqrt %103 : vector<8x1xf32>
    %105 = vector.broadcast %104 : vector<8x1xf32> to vector<8x32xf32>
    %106 = arith.mulf %96, %105 : vector<8x32xf32>
    %c0_39 = arith.constant 0 : index
    %c0_40 = arith.constant 0 : index
    %107 = vector.load %arg7[%c0_39, %c0_40] : memref<1x32xf32, #tpu.memory_space<vmem>>, vector<1x32xf32>
    %108 = vector.broadcast %107 : vector<1x32xf32> to vector<8x32xf32>
    %109 = arith.mulf %106, %108 : vector<8x32xf32>
    %c0_41 = arith.constant 0 : index
    %c0_42 = arith.constant 0 : index
    %110 = vector.load %arg8[%c0_41, %c0_42] : memref<1x32xf32, #tpu.memory_space<vmem>>, vector<1x32xf32>
    %111 = vector.broadcast %110 : vector<1x32xf32> to vector<8x32xf32>
    %112 = arith.addf %109, %111 : vector<8x32xf32>
    %c0_43 = arith.constant 0 : index
    %c0_44 = arith.constant 0 : index
    %113 = vector.load %arg9[%c0_43, %c0_44] : memref<32x64xf32, #tpu.memory_space<vmem>>, vector<32x64xf32>
    %cst_45 = arith.constant dense<0.000000e+00> : vector<8x64xf32>
    %114 = tpu.matmul %112, %113, %cst_45 {dimension_numbers = #tpu.dot_dimension_numbers<[1], [0], [0], [1], [0, 0, 1, 1], [], []>} : vector<8x32xf32>, vector<32x64xf32>, vector<8x64xf32> -> vector<8x64xf32>
    %c0_46 = arith.constant 0 : index
    %c0_47 = arith.constant 0 : index
    %115 = vector.load %arg10[%c0_46, %c0_47] : memref<1x64xf32, #tpu.memory_space<vmem>>, vector<1x64xf32>
    %116 = vector.broadcast %115 : vector<1x64xf32> to vector<8x64xf32>
    %117 = arith.addf %114, %116 : vector<8x64xf32>
    %cst_48 = arith.constant 0.000000e+00 : f32
    %118 = vector.broadcast %cst_48 : f32 to vector<8x64xf32>
    %119 = arith.maximumf %117, %118 : vector<8x64xf32>
    %c0_49 = arith.constant 0 : index
    %c0_50 = arith.constant 0 : index
    %120 = vector.load %arg11[%c0_49, %c0_50] : memref<64x32xf32, #tpu.memory_space<vmem>>, vector<64x32xf32>
    %cst_51 = arith.constant dense<0.000000e+00> : vector<8x32xf32>
    %121 = tpu.matmul %119, %120, %cst_51 {dimension_numbers = #tpu.dot_dimension_numbers<[1], [0], [0], [1], [0, 0, 1, 1], [], []>} : vector<8x64xf32>, vector<64x32xf32>, vector<8x32xf32> -> vector<8x32xf32>
    %c0_52 = arith.constant 0 : index
    %c0_53 = arith.constant 0 : index
    %122 = vector.load %arg12[%c0_52, %c0_53] : memref<1x32xf32, #tpu.memory_space<vmem>>, vector<1x32xf32>
    %123 = vector.broadcast %122 : vector<1x32xf32> to vector<8x32xf32>
    %124 = arith.addf %121, %123 : vector<8x32xf32>
    %125 = arith.addf %112, %124 : vector<8x32xf32>
    %cst_54 = arith.constant dense<0.000000e+00> : vector<8xf32>
    %126 = vector.multi_reduction <add>, %125, %cst_54 [1] : vector<8x32xf32> to vector<8xf32>
    %127 = vector.shape_cast %126 : vector<8xf32> to vector<8x1xf32>
    %cst_55 = arith.constant 3.200000e+01 : f32
    %128 = vector.broadcast %cst_55 : f32 to vector<8x1xf32>
    %129 = arith.divf %127, %128 : vector<8x1xf32>
    %130 = vector.broadcast %129 : vector<8x1xf32> to vector<8x32xf32>
    %131 = arith.subf %125, %130 : vector<8x32xf32>
    %132 = arith.mulf %131, %131 : vector<8x32xf32>
    %cst_56 = arith.constant dense<0.000000e+00> : vector<8xf32>
    %133 = vector.multi_reduction <add>, %132, %cst_56 [1] : vector<8x32xf32> to vector<8xf32>
    %134 = vector.shape_cast %133 : vector<8xf32> to vector<8x1xf32>
    %cst_57 = arith.constant 3.200000e+01 : f32
    %135 = vector.broadcast %cst_57 : f32 to vector<8x1xf32>
    %136 = arith.divf %134, %135 : vector<8x1xf32>
    %cst_58 = arith.constant 9.99999974E-6 : f32
    %137 = vector.broadcast %cst_58 : f32 to vector<8x1xf32>
    %138 = arith.addf %136, %137 : vector<8x1xf32>
    %139 = math.rsqrt %138 : vector<8x1xf32>
    %140 = vector.broadcast %139 : vector<8x1xf32> to vector<8x32xf32>
    %141 = arith.mulf %131, %140 : vector<8x32xf32>
    %c0_59 = arith.constant 0 : index
    %c0_60 = arith.constant 0 : index
    %142 = vector.load %arg13[%c0_59, %c0_60] : memref<1x32xf32, #tpu.memory_space<vmem>>, vector<1x32xf32>
    %143 = vector.broadcast %142 : vector<1x32xf32> to vector<8x32xf32>
    %144 = arith.mulf %141, %143 : vector<8x32xf32>
    %c0_61 = arith.constant 0 : index
    %c0_62 = arith.constant 0 : index
    %145 = vector.load %arg14[%c0_61, %c0_62] : memref<1x32xf32, #tpu.memory_space<vmem>>, vector<1x32xf32>
    %146 = vector.broadcast %145 : vector<1x32xf32> to vector<8x32xf32>
    %147 = arith.addf %144, %146 : vector<8x32xf32>
    %c0_63 = arith.constant 0 : index
    %c0_64 = arith.constant 0 : index
    %c0_65 = arith.constant 0 : index
    %148 = vector.load %arg15[%c0_63, %c0_64, %c0_65] : memref<1x8x32xf32, #tpu.memory_space<vmem>>, vector<1x8x32xf32>
    %149 = vector.shape_cast %148 : vector<1x8x32xf32> to vector<8x32xf32>
    %150 = vector.shape_cast %147 : vector<8x32xf32> to vector<1x8x32xf32>
    tpu.vector_store %arg15[%c0_63, %c0_64, %c0_65], %150 {strides = array<i32>} : memref<1x8x32xf32, #tpu.memory_space<vmem>>, vector<1x8x32xf32>,
    return
  }
  func.func @transform_0(%arg0: i32) -> (i32, i32, i32) {
    %c0_i32 = arith.constant 0 : i32
    %c0_i32_0 = arith.constant 0 : i32
    %c0_i32_1 = arith.constant 0 : i32
    return %arg0, %c0_i32, %c0_i32_0 : i32, i32, i32
  }
  func.func @transform_1(%arg0: i32) -> (i32, i32, i32) {
    %c0_i32 = arith.constant 0 : i32
    %c0_i32_0 = arith.constant 0 : i32
    %c0_i32_1 = arith.constant 0 : i32
    return %arg0, %c0_i32, %c0_i32_0 : i32, i32, i32
  }
  func.func @transform_2(%arg0: i32) -> (i32, i32) {
    %c0_i32 = arith.constant 0 : i32
    %c0_i32_0 = arith.constant 0 : i32
    %c0_i32_1 = arith.constant 0 : i32
    return %c0_i32, %c0_i32_0 : i32, i32
  }
  func.func @transform_3(%arg0: i32) -> (i32, i32) {
    %c0_i32 = arith.constant 0 : i32
    %c0_i32_0 = arith.constant 0 : i32
    %c0_i32_1 = arith.constant 0 : i32
    return %c0_i32, %c0_i32_0 : i32, i32
  }
  func.func @transform_4(%arg0: i32) -> (i32, i32) {
    %c0_i32 = arith.constant 0 : i32
    %c0_i32_0 = arith.constant 0 : i32
    %c0_i32_1 = arith.constant 0 : i32
    return %c0_i32, %c0_i32_0 : i32, i32
  }
  func.func @transform_5(%arg0: i32) -> (i32, i32) {
    %c0_i32 = arith.constant 0 : i32
    %c0_i32_0 = arith.constant 0 : i32
    %c0_i32_1 = arith.constant 0 : i32
    return %c0_i32, %c0_i32_0 : i32, i32
  }
  func.func @transform_6(%arg0: i32) -> (i32, i32) {
    %c0_i32 = arith.constant 0 : i32
    %c0_i32_0 = arith.constant 0 : i32
    %c0_i32_1 = arith.constant 0 : i32
    return %c0_i32, %c0_i32_0 : i32, i32
  }
  func.func @transform_7(%arg0: i32) -> (i32, i32) {
    %c0_i32 = arith.constant 0 : i32
    %c0_i32_0 = arith.constant 0 : i32
    %c0_i32_1 = arith.constant 0 : i32
    return %c0_i32, %c0_i32_0 : i32, i32
  }
  func.func @transform_8(%arg0: i32) -> (i32, i32) {
    %c0_i32 = arith.constant 0 : i32
    %c0_i32_0 = arith.constant 0 : i32
    %c0_i32_1 = arith.constant 0 : i32
    return %c0_i32, %c0_i32_0 : i32, i32
  }
  func.func @transform_9(%arg0: i32) -> (i32, i32) {
    %c0_i32 = arith.constant 0 : i32
    %c0_i32_0 = arith.constant 0 : i32
    %c0_i32_1 = arith.constant 0 : i32
    return %c0_i32, %c0_i32_0 : i32, i32
  }
  func.func @transform_10(%arg0: i32) -> (i32, i32) {
    %c0_i32 = arith.constant 0 : i32
    %c0_i32_0 = arith.constant 0 : i32
    %c0_i32_1 = arith.constant 0 : i32
    return %c0_i32, %c0_i32_0 : i32, i32
  }
  func.func @transform_11(%arg0: i32) -> (i32, i32) {
    %c0_i32 = arith.constant 0 : i32
    %c0_i32_0 = arith.constant 0 : i32
    %c0_i32_1 = arith.constant 0 : i32
    return %c0_i32, %c0_i32_0 : i32, i32
  }
  func.func @transform_12(%arg0: i32) -> (i32, i32) {
    %c0_i32 = arith.constant 0 : i32
    %c0_i32_0 = arith.constant 0 : i32
    %c0_i32_1 = arith.constant 0 : i32
    return %c0_i32, %c0_i32_0 : i32, i32
  }
  func.func @transform_13(%arg0: i32) -> (i32, i32) {
    %c0_i32 = arith.constant 0 : i32
    %c0_i32_0 = arith.constant 0 : i32
    %c0_i32_1 = arith.constant 0 : i32
    return %c0_i32, %c0_i32_0 : i32, i32
  }
  func.func @transform_14(%arg0: i32) -> (i32, i32, i32) {
    %c0_i32 = arith.constant 0 : i32
    %c0_i32_0 = arith.constant 0 : i32
    %c0_i32_1 = arith.constant 0 : i32
    return %arg0, %c0_i32, %c0_i32_0 : i32, i32, i32
  }
}

</mosaic_0001>

<bundles_post_ra>
// kernel: tpu_custom_call.1
= control target key start
LH: loop header
LB: loop body
LE: loop exit
PB: predicated region body
PF: predicated region fallthrough
CT: control target
= control target key end

     0   :  { %s1834_s0 = inlined_call_operand.hbm [shape: f32[2,8,32], index: 0, kind: input, shape index: {}]   ;;  %s1835_s1 = inlined_call_operand.hbm [shape: f32[2,1,8], index: 1, kind: input, shape index: {}]   ;;  %s1836_s2 = inlined_call_operand.vmem [shape: f32[32,96], index: 2, kind: input, shape index: {}]   ;;  %s1837_s3 = inlined_call_operand.vmem [shape: f32[1,96], index: 3, kind: input, shape index: {}]   ;;  %s1838_s4 = inlined_call_operand.vmem [shape: f32[32,32], index: 4, kind: input, shape index: {}]   ;;  %s1839_s5 = inlined_call_operand.vmem [shape: f32[1,32], index: 5, kind: input, shape index: {}]   ;;  %s1840_s6 = inlined_call_operand.vmem [shape: f32[1,32], index: 6, kind: input, shape index: {}]   ;;  %s1841_s7 = inlined_call_operand.vmem [shape: f32[1,32], index: 7, kind: input, shape index: {}]   ;;  %s1842_s8 = inlined_call_operand.vmem [shape: f32[32,64], index: 8, kind: input, shape index: {}]   ;;  %s1843_s9 = inlined_call_operand.vmem [shape: f32[1,64], index: 9, kind: input, shape index: {}]   ;;  %s1844_s10 = inlined_call_operand.vmem [shape: f32[64,32], index: 10, kind: input, shape index: {}]   ;;  %s1845_s11 = inlined_call_operand.vmem [shape: f32[1,32], index: 11, kind: input, shape index: {}]   ;;  %s1846_s12 = inlined_call_operand.vmem [shape: f32[1,32], index: 12, kind: input, shape index: {}]   ;;  %s1847_s13 = inlined_call_operand.vmem [shape: f32[1,32], index: 13, kind: input, shape index: {}]   ;;  %s1848_s14 = inlined_call_operand.hbm [shape: f32[2,8,32], index: 14, kind: output, shape index: {}]  }
   0x1   :  { %1857 = sst [smem:[#allocation17_spill]] %s1834_s0 }
   0x2   :  { %1858 = sst [smem:[#allocation18_spill]] %s1847_s13 }
   0x3   :  { %1859 = sst [smem:[#allocation19_spill]] %s1848_s14 }
   0x4   :  { %19 = vsyncpa [#allocation3], 0 }
   0x5   :  { %21 = vsyncpa [#allocation3 + $0x1], 0 }
   0x6   :  { %22 = vsyncpa [#allocation6], 0 }
   0x7   :  { %24 = vsyncpa [#allocation6 + $0x1], 0 }
   0x8   :  { %25 = vsyncpa [#allocation4], 0 }
   0x9   :  { %27 = vsyncpa [#allocation4 + $0x1], 0  ;;  %s1519_s29 = smov 0   ;;  %s1521_s30 = smov 0  }
   0xa   :  { %s1523_s15 = smov 0   ;;  %s1525_s16 = smov 0  }
   0xb LB: > { %1860 = sst [smem:[#allocation11_spill]] %s1415_s29  ;;  %s1540_s17 = sadd.s32 4294967295, %s1427_s16   ;;  %s1427_s16 = sphi %s1525_s16, %s1879_s16   ;;  %s1423_s15 = sphi %s1523_s15, %s1881_s15   ;;  %s1419_s30 = sphi %s1521_s30, %s1883_s30   ;;  %s1415_s29 = sphi %s1519_s29, %s1882_s29  }
   0xc   : > { %1861 = sst [smem:[#allocation12_spill]] %s1423_s15  ;;  %s1172_s18 = sadd.s32 4294967294, %s1427_s16  }
   0xd   : > { %s1544_s19 = sadd.s32 1, %s1427_s16   ;;  %s40_s20 = sadd.s32 1, %s1423_s15 }
   0xe   : > { %1862 = sst [smem:[#allocation13_spill]] %s1544_s19  ;;  %s37_s21 = ssub.s32 %s1427_s16, %s1544_s19 }
   0xf   : > { %p47_p0 = scmp.ne.s32.totalorder %s1423_s15, %s1419_s30  ;;  %p38_p1 = scmp.eq.s32.totalorder %s37_s21, 0 }
  0x10   : > { %p48_p2 = scmp.eq.s32.totalorder %s1427_s16, 0  ;;  %p53_p3 = scmp.ne.s32.totalorder %s1419_s30, %s1415_s29 }
  0x11   : > { %p54_p4 = scmp.eq.s32.totalorder %s1540_s17, 0  ;;  %p355_p7 = scmp.eq.s32.totalorder %s1540_s17, 1 }
  0x12   : > { %s1556_s22 = scalar_select %p38_p1, %s1423_s15, %s40_s20  }
  0x13   : > { %p1558_p5 = por %p48_p2, %p47_p0  ;;  %p1562_p6 = por %p54_p4, %p53_p3 }
  0x14   : > { %1863 = sst [smem:[#allocation14_spill]] %s1556_s22  ;;  %p361_p8 = scmp.eq.s32.totalorder %s1172_s18, 1 }
  0x15   : > { %p1217_p10 = scmp.lt.s32.totalorder %s1427_s16, 2  ;;  %p1569_p11 = por %p355_p7, %p47_p0 }
  0x16   : > { %p1573_p12 = por %p361_p8, %p53_p3  ;;  %s1578_s27 = sand.u32 1, %s1423_s15  }
  0x17   : > { %s1866_s25 = scalar_select %p1569_p11, 1, 0 }
  0x18   : > { %s1868_s26 = scalar_select %p1573_p12, 1, 0 }
  0x19   : > { %1867 = sst [smem:[#allocation15_spill]] %s1866_s25  ;;  %s1176_s28 = sshll.u32 %s1427_s16, 3 }
  0x1a   : > { %1869 = sst [smem:[#allocation16_spill]] %s1868_s26  ;;  %s1175_s20 = sshll.u32 %s1578_s27, 3 }
  0x1b   : > { %s1870_s0 = sld [smem:[#allocation17_spill]]  ;;  %s421_s29 = scalar_lea.vmem [#allocation2], %s1175_s20 }
  0x1c   : > { %s429_s13 = sshll.u32 %s421_s29, 4  ;;  %p1587_p13 = pnand %p1217_p10, %p1558_p5  ;;  %s430_s13 = int_to_ptr.vmem [resolvable:$true] %s429_s13 }
  0x1d   : > { %p1177_p0 = scmp.ge.s32.totalorder %s1427_s16, 1  ;;  %p451_p1 = scmp.lt.s32.totalorder %s1427_s16, 3 }
  0x1e   : > { %s418_s15 = scalar_lea.sflag [#allocation3], %s1578_s27  ;;  %p1301_p3 = pneg %p1587_p13 }
  0x21   : > { %s425_s18 = scalar_lea.hbm %s1870_s0, %s1176_s28  ;;  %s1304_s23 = scalar_lea.hbm %s1870_s0, 16 }
  0x22   : > { %s427_s19 = sshll.u32 %s425_s18, 4  ;;  %s428_s19 = int_to_ptr.hbm [resolvable:$true] %s427_s19 }
  0x23   : > { %s1297_s26 = sshra.s32 %s428_s19, 4  ;;  %s1298_s26 = int_to_ptr.hbm [resolvable:$true] %s1297_s26 }
  0x24   : > { %s1299_s14 = scalar_lea.hbm %s1298_s26, 8  ;;  %p1305_p5 = scmp.lt.s32.totalorder %s1298_s26, %s1870_s0 }
  0x25   : > { %p1300_p2 = scmp.ne.s32.totalorder %s1298_s26, %s1299_s14  ;;  %p1306_p8 = scmp.lt.s32.totalorder %s1304_s23, %s1299_s14 }
  0x27   : > { %p1302_p4 = pnand %p1301_p3, %p1300_p2  ;;  %p1307_p10 = por %p1306_p8, %p1305_p5 }
  0x29   : > { %p1303_p7 = pneg %p1302_p4 }
  0x2b   : > { %p1308_p9 = pnand %p1307_p10, %p1303_p7 }
  0x2d   : > { %1311 = shalt.err (!%p1308_p9)
}
  0x2e   : > { %1209 = dma.hbm_to_vmem [thread:$0]  (!%p1587_p13), %s428_s19, 128, %s430_s13, %s418_s15  }
  0x2f   : > { %p1611_p2 = pnand %p1177_p0, %p451_p1  ;;  %s442_s18 = scalar_lea.hbm %s1835_s1, %s1427_s16 }
  0x30   : > { %s444_s29 = sshll.u32 %s442_s18, 4  ;;  %s439_s22 = scalar_lea.vmem [#allocation5], %s1578_s27  ;;  %s445_s29 = int_to_ptr.hbm [resolvable:$true] %s444_s29 }
  0x31   : > { %s446_s23 = sshll.u32 %s439_s22, 4  ;;  %s437_s28 = scalar_lea.sflag [#allocation6], %s1578_s27  ;;  %s447_s23 = int_to_ptr.vmem [resolvable:$true] %s446_s23 }
  0x32   : > { %s1327_s20 = sshra.s32 %s445_s29, 4  ;;  %s1334_s19 = scalar_lea.hbm %s1835_s1, 2  ;;  %s1328_s20 = int_to_ptr.hbm [resolvable:$true] %s1327_s20 }
  0x33   : > { %s1329_s0 = scalar_lea.hbm %s1328_s20, 1  ;;  %p1335_p4 = scmp.lt.s32.totalorder %s1328_s20, %s1835_s1 }
  0x34   : > { %p1330_p9 = scmp.ne.s32.totalorder %s1328_s20, %s1329_s0  ;;  %p1336_p7 = scmp.lt.s32.totalorder %s1334_s19, %s1329_s0 }
  0x36   : > { %p1332_p0 = pnand %p1330_p9, %p1301_p3  ;;  %p1337_p5 = por %p1336_p7, %p1335_p4 }
  0x38   : > { %p1333_p1 = pneg %p1332_p0 }
  0x3a   : > { %p1338_p8 = pnand %p1337_p5, %p1333_p1 }
  0x3c   : > { %1341 = shalt.err (!%p1338_p8)
}
  0x3d   : > { %1212 = dma.hbm_to_vmem [thread:$0]  (!%p1587_p13), %s445_s29, 16, %s447_s23, %s437_s28  }
  0x3e   : > { %455 = sbr.rel (%p1611_p2) target bundleno = 2324 (0x914), region = 76  ;;  %s1635_s27 = sand.u32 (!%p1611_p2), 1, %s1419_s30  }
  0x3f   : > { %s1178_s18 = sshll.u32 (!%p1611_p2), %s1635_s27, 3  ;;  %s458_s22 = scalar_lea.sflag (!%p1611_p2), [#allocation3], %s1635_s27 }
  0x40   : > { %s461_s0 = scalar_lea.vmem (!%p1611_p2), [#allocation2], %s1178_s18 }
  0x43   : > { %1402 = dma.done.wait (%p1562_p6), %s458_s22, 128  }
  0x44   : > { %1404 = vsyncadd (%p1562_p6), %s458_s22, 4294967168  ;;  %s468_s25 = scalar_lea.sflag [#allocation6], %s1635_s27  ;;  %s470_s21 = scalar_lea.vmem [#allocation5], %s1635_s27 }
  0x45   : > { %1406 = dma.done.wait (%p1562_p6), %s468_s25, 16  }
  0x46   : > { %1408 = vsyncadd (%p1562_p6), %s468_s25, 4294967280  ;;  %v525_v0 = vld [vmem:[%s1836_s2 + $0x18] sm:$0xff]  ;;  %v524_v1 = vld [vmem:[%s1836_s2 + $0x10] sm:$0xff]  ;;  %vm530_vm0 = vcmask 261120   ;;  %s1429_s22 = smov 64   ;;  %s1430_s25 = smov 120  }
  0x47   : > { %546 = vmatpush.msra.mxu0 %v525_v0  ;;  %v523_v2 = vld [vmem:[%s1836_s2 + $0x8] sm:$0xff]  ;;  %v522_v3 = vld [vmem:[%s1836_s2] sm:$0xff]  ;;  %s1432_s29 = smov 56   ;;  %s1433_s23 = smov 88   ;;  %vm557_vm1 = vcmask 64512  }
  0x48   : > { %v1663_v4 = vld [vmem:[%s461_s0] sm:$0xff]  ;;  %s1431_s0 = smov 96   ;;  %s1434_s28 = smov 104  }
  0x49   : > { %547 = vmatpush.msra.mxu0 %v524_v1  ;;  %v1266_v5 = vld [vmem:[%s1837_s3] ss:$0 sm:$0xff]  ;;  %s1435_s20 = smov 72   ;;  %s1437_s13 = smov 112  }
  0x4a   : > { %v1684_v13 = vld [vmem:[%s470_s21] ss:$0 sm:$0xff]  ;;  %s1436_s21 = smov 80   ;;  %s1438_s15 = smov 40  }
  0x4b   : > { %548 = vmatpush.msra.mxu0 %v523_v2  ;;  %s1439_s19 = smov 8   ;;  %s1440_s26 = smov 48  }
  0x4c   : > { %s1441_s24 = smov 16   ;;  %s1442_s14 = smov 24  }
  0x4d   : > { %549 = vmatpush.msra.mxu0 %v522_v3 }
  0x4e   : > { %1180 = vmatmul.msk.f32.vlgmr.msra.gmra.mxu0 %vm530_vm0, %v1663_v4 }
  0xcb   : > { %v551_v6 = vpop.f32.mrf.mxu0 }
  0xcc   : > { %v1670_v7 = vadd.f32 %v1266_v5, %v551_v6 }
  0xce   : > { %611 = vrot.lane.b32.xlu2 %v1670_v7, %s1429_s22  ;;  %637 = vrot.lane.b32.xlu1 %v1670_v7, %s1430_s25  ;;  %s1197_s22 = sshll.u32 %s1540_s17, 3  ;;  %s519_s17 = scalar_lea.vmem [#allocation7], %s1178_s18 }
  0xcf   : > { %555 = vrot.lane.b32.xlu0 %v1670_v7, %s1431_s0 }
  0xd6   : > { %691 = vrot.lane.b32.xlu2 %v1670_v7, %s1432_s29 }
  0xd7   : > { %639 = vrot.lane.b32.xlu0 %v1670_v7, %s1433_s23 }
 0x128   : > { %v612_v8 = vpop.permute.xlu2 %611 }
 0x129   : > { %632 = vmatpush.msra.mxu2 %v612_v8 }
 0x130   : > { %v692_v9 = vpop.permute.xlu2 %691 }
 0x131   : > { %712 = vmatpush.msrb.mxu2 %v692_v9 }
 0x140   : > { %v638_v12 = vpop.permute.xlu1 %637 }
 0x141   : > { %v556_v10 = vpop.permute.xlu0 %555 }
 0x142   : > { %1181 = vmatpush.xpose.msk.msra.mxu1 %vm557_vm1, %v556_v10 }
 0x145   : > { %1182 = vmatmul.msk.f32.vlgmr.msra.gmra.mxu1 %vm557_vm1, %v1670_v7 }
 0x149   : > { %v640_v11 = vpop.permute.xlu0 %639 }
 0x14a   : > { %1184 = vmatpush.xpose.msk.msra.mxu3 %vm557_vm1, %v640_v11 }
 0x14d   : > { %1185 = vmatmul.msk.f32.vlgmr.msra.gmra.mxu3 %vm557_vm1, %v638_v12 }
 0x1c2   : > { %v579_v14 = vpop.f32.mrf.mxu1 }
 0x1c3   : > { %v582_v15 = vmul.f32 0.35355338, %v579_v14 }
 0x1c5   : > { %v586_v16 = vadd.f32 %v1684_v13, %v582_v15 }
 0x1c7   : > { %v587_v17 = vsel %vm557_vm1, %v586_v16, -inf }
 0x1c8   : > { %588 = vmax.xlane.f32.xlu1 %v587_v17 }
 0x1d0   : > { %v662_v18 = vpop.f32.mrf.mxu3 }
 0x1d1   : > { %v665_v19 = vmul.f32 0.35355338, %v662_v18 }
 0x1d3   : > { %v666_v20 = vadd.f32 %v1684_v13, %v665_v19 }
 0x1d5   : > { %v667_v21 = vsel %vm557_vm1, %v666_v20, -inf }
 0x1d6   : > { %668 = vmax.xlane.f32.xlu2 %v667_v21 }
 0x1e1   : > { %797 = vrot.lane.b32.xlu1 %v1670_v7, %s1434_s28  ;;  %s1873_s28 = sld [smem:[#allocation19_spill]] }
 0x1e7   : > { %s1377_s18 = scalar_lea.hbm %s1873_s28, 16 }
 0x1ee   : > { %799 = vrot.lane.b32.xlu2 %v1670_v7, %s1435_s20  ;;  %s1078_s20 = scalar_lea.hbm %s1873_s28, %s1197_s22 }
 0x23b   : > { %v589_v22 = vpop.xlane.xlu1 %588 }
 0x23c   : > { %v590_v23 = vsub.f32 %v586_v16, %v589_v22 }
 0x23e   : > { %v591_v24 = vmul.f32 1.442695, %v590_v23 }
 0x240   : > { %1275 = vpow2.f32 %v591_v24 }
 0x246   : > { %v1276_v25 = vpop.eup %1275 }
 0x247   : > { %v593_v26 = vsel %vm557_vm1, %v1276_v25, 0.0 }
 0x248   : > { %594 = vadd.xlane.f32.xlu2 %v593_v26 }
 0x249   : > { %v669_v27 = vpop.xlane.xlu2 %668 }
 0x24a   : > { %v670_v28 = vsub.f32 %v666_v20, %v669_v27 }
 0x24c   : > { %v671_v29 = vmul.f32 1.442695, %v670_v28 }
 0x24e   : > { %1277 = vpow2.f32 %v671_v29 }
 0x251   : > { %v800_v32 = vpop.permute.xlu2 %799 }
 0x253   : > { %v798_v59 = vpop.permute.xlu1 %797 }
 0x254   : > { %v1278_v30 = vpop.eup %1277 }
 0x255   : > { %v673_v31 = vsel %vm557_vm1, %v1278_v30, 0.0 }
 0x256   : > { %674 = vadd.xlane.f32.xlu0 %v673_v31 }
 0x260   : > { %719 = vrot.lane.b32.xlu2 %v1670_v7, %s1436_s21 }
 0x26a   : > { %717 = vrot.lane.b32.xlu0 %v1670_v7, %s1437_s13 }
 0x2bb   : > { %v595_v33 = vpop.xlane.xlu2 %594 }
 0x2bc   : > { %1279 = vrcp.f32 %v595_v33  ;;  %v607_v38 = vand.u32 2147483648, %v595_v33  ;;  %v605_v40 = vand.u32 2147483647, %v595_v33  ;;  %vm601_vm3 = vweird.f32 %v595_v33 }
 0x2be   : > { %v608_v43 = vor.u32 1.1754944e-38, %v607_v38  ;;  %vm606_vm5 = vcmp.eq.f32.partialorder %v605_v40, 8.507059e+37 }
 0x2c2   : > { %v1280_v34 = vpop.eup %1279 }
 0x2c3   : > { %v597_v35 = vmul.f32 %v1280_v34, %v595_v33  ;;  %v720_v36 = vpop.permute.xlu2 %719  ;;  %vm602_vm2 = vweird.f32 %v1280_v34 }
 0x2c4   : > { %1187 = vmatpush.xpose.msk.msrb.mxu1 %vm557_vm1, %v720_v36  ;;  %vm603_vm4 = vmor %vm601_vm3, %vm602_vm2 }
 0x2c5   : > { %v598_v37 = vsub.f32 1.0, %v597_v35 }
 0x2c7   : > { %v599_v39 = vmul.f32 %v1280_v34, %v598_v37 }
 0x2c9   : > { %v675_v41 = vpop.xlane.xlu0 %674  ;;  %v600_v42 = vadd.f32 %v1280_v34, %v599_v39 }
 0x2ca   : > { %1281 = vrcp.f32 %v675_v41  ;;  %v687_v50 = vand.u32 2147483648, %v675_v41  ;;  %v685_v52 = vand.u32 2147483647, %v675_v41  ;;  %vm681_vm7 = vweird.f32 %v675_v41 }
 0x2cb   : > { %v604_v44 = vsel %vm603_vm4, %v1280_v34, %v600_v42  ;;  %vm890_vm4 = vcmask 130048  }
 0x2cc   : > { %v609_v45 = vsel %vm606_vm5, %v608_v43, %v604_v44  ;;  %v688_v54 = vor.u32 1.1754944e-38, %v687_v50  ;;  %vm686_vm9 = vcmp.eq.f32.partialorder %v685_v52, 8.507059e+37  ;;  %vm892_vm5 = vcmask 195584  }
 0x2cd   : > { %v610_v46 = vmul.f32 %v1276_v25, %v609_v45  ;;  %v897_v45 = vld [vmem:[%s1838_s4 + $0x18] sm:$0xff] }
 0x2ce   : > { %917 = vmatpush.msra.mxu1 %v897_v45 }
 0x2cf   : > { %1183 = vmatmul.msk.f32.vlgmr.msra.gmra.mxu2 %vm557_vm1, %v610_v46  ;;  %v896_v46 = vld [vmem:[%s1838_s4 + $0x10] sm:$0xff] }
 0x2d0   : > { %v1282_v47 = vpop.eup %1281  ;;  %1190 = vmatpush.xpose.msk.msra.mxu2 %vm557_vm1, %v800_v32  ;;  %918 = vmatpush.msra.mxu1 %v896_v46 }
 0x2d1   : > { %v677_v48 = vmul.f32 %v1282_v47, %v675_v41  ;;  %vm682_vm6 = vweird.f32 %v1282_v47 }
 0x2d2   : > { %vm683_vm8 = vmor %vm681_vm7, %vm682_vm6 }
 0x2d3   : > { %v678_v49 = vsub.f32 1.0, %v677_v48  ;;  %v894_v48 = vld [vmem:[%s1838_s4] sm:$0xff] }
 0x2d5   : > { %v679_v51 = vmul.f32 %v1282_v47, %v678_v49 }
 0x2d7   : > { %v680_v53 = vadd.f32 %v1282_v47, %v679_v51 }
 0x2d9   : > { %v684_v55 = vsel %vm683_vm8, %v1282_v47, %v680_v53  ;;  %v895_v47 = vld [vmem:[%s1838_s4 + $0x8] sm:$0xff] }
 0x2da   : > { %v689_v56 = vsel %vm686_vm9, %v688_v54, %v684_v55  ;;  %919 = vmatpush.msra.mxu1 %v895_v47  ;;  %v1268_v55 = vld [vmem:[%s1839_s5] ss:$0 sm:$0xff]  ;;  %vm1009_vm9 = vcmask 523264  }
 0x2db   : > { %v690_v57 = vmul.f32 %v1278_v30, %v689_v56 }
 0x2dc   : > { %v718_v58 = vpop.permute.xlu0 %717  ;;  %920 = vmatpush.msra.mxu1 %v894_v48 }
 0x2dd   : > { %1186 = vmatmul.msk.f32.vlgmr.msrb.gmra.mxu2 %vm557_vm1, %v690_v57  ;;  %1188 = vmatmul.msk.f32.vlgmr.msrb.gmra.mxu1 %vm557_vm1, %v718_v58 }
 0x2e5   : > { %1191 = vmatmul.msk.f32.vlgmr.msra.gmra.mxu2 %vm557_vm1, %v798_v59 }
 0x352   : > { %v1702_v60 = vpop.f32.mrf.mxu2 }
 0x35a   : > { %v742_v61 = vpop.f32.mrf.mxu1 }
 0x35b   : > { %v745_v62 = vmul.f32 0.35355338, %v742_v61  ;;  %v1443_v61 = vmov 32.0  }
 0x35d   : > { %v746_v63 = vadd.f32 %v1684_v13, %v745_v62 }
 0x35f   : > { %v747_v0 = vsel %vm557_vm1, %v746_v63, -inf }
 0x360   : > { %v714_v1 = vpop.f32.mrf.mxu2  ;;  %748 = vmax.xlane.f32.xlu2 %v747_v0 }
 0x368   : > { %v822_v2 = vpop.f32.mrf.mxu2 }
 0x369   : > { %v825_v3 = vmul.f32 0.35355338, %v822_v2 }
 0x36b   : > { %v826_v5 = vadd.f32 %v1684_v13, %v825_v3 }
 0x36d   : > { %v827_v6 = vsel %vm557_vm1, %v826_v5, -inf }
 0x36e   : > { %828 = vmax.xlane.f32.xlu1 %v827_v6 }
 0x387   : > { %851 = vrot.lane.b32.xlu1 %v1670_v7, %s1438_s15 }
 0x3d3   : > { %v749_v8 = vpop.xlane.xlu2 %748 }
 0x3d4   : > { %v750_v9 = vsub.f32 %v746_v63, %v749_v8 }
 0x3d6   : > { %v751_v10 = vmul.f32 1.442695, %v750_v9  ;;  %v968_v9 = vld [vmem:[%s1842_s8 + $0x18] sm:$0xff] }
 0x3d8   : > { %1283 = vpow2.f32 %v751_v10  ;;  %v967_v10 = vld [vmem:[%s1842_s8 + $0x10] sm:$0xff] }
 0x3de   : > { %v1284_v11 = vpop.eup %1283 }
 0x3df   : > { %v753_v12 = vsel %vm557_vm1, %v1284_v11, 0.0 }
 0x3e0   : > { %754 = vadd.xlane.f32.xlu0 %v753_v12  ;;  %v965_v12 = vld [vmem:[%s1842_s8] sm:$0xff] }
 0x3e1   : > { %v829_v14 = vpop.xlane.xlu1 %828 }
 0x3e2   : > { %v830_v15 = vsub.f32 %v826_v5, %v829_v14  ;;  %v1004_v14 = vld [vmem:[%s1844_s10 + $0x38] sm:$0xff] }
 0x3e3   : > { %1021 = vmatpush.msrb.mxu0 %v1004_v14 }
 0x3e4   : > { %v831_v16 = vmul.f32 1.442695, %v830_v15  ;;  %v1003_v15 = vld [vmem:[%s1844_s10 + $0x30] sm:$0xff] }
 0x3e5   : > { %1022 = vmatpush.msrb.mxu0 %v1003_v15 }
 0x3e6   : > { %1285 = vpow2.f32 %v831_v16  ;;  %v1002_v16 = vld [vmem:[%s1844_s10 + $0x28] sm:$0xff] }
 0x3e7   : > { %1023 = vmatpush.msrb.mxu0 %v1002_v16 }
 0x3ec   : > { %v1286_v17 = vpop.eup %1285 }
 0x3ed   : > { %v833_v13 = vsel %vm557_vm1, %v1286_v17, 0.0 }
 0x3ee   : > { %834 = vadd.xlane.f32.xlu2 %v833_v13 }
 0x3f4   : > { %878 = vrot.lane.b32.xlu0 %v714_v1, %s1439_s19  ;;  %s1875_s19 = sld [smem:[#allocation18_spill]] }
 0x3f9   : > { %v852_v18 = vpop.permute.xlu1 %851 }
 0x3fa   : > { %872 = vmatpush.msrb.mxu2 %v852_v18  ;;  %v1001_v18 = vld [vmem:[%s1844_s10 + $0x20] sm:$0xff] }
 0x3fb   : > { %1024 = vmatpush.msrb.mxu0 %v1001_v18 }
 0x406   : > { %771 = vrot.lane.b32.xlu2 %v1670_v7, %s1440_s26  ;;  %s1080_s26 = sshll.u32 %s519_s17, 4  ;;  %s1081_s26 = int_to_ptr.vmem [resolvable:$true] %s1080_s26 }
 0x453   : > { %v755_v19 = vpop.xlane.xlu0 %754 }
 0x454   : > { %1287 = vrcp.f32 %v755_v19  ;;  %v767_v24 = vand.u32 2147483648, %v755_v19  ;;  %vm761_vm11 = vweird.f32 %v755_v19  ;;  %v765_v26 = vand.u32 2147483647, %v755_v19 }
 0x456   : > { %v768_v29 = vor.u32 1.1754944e-38, %v767_v24  ;;  %vm766_vm13 = vcmp.eq.f32.partialorder %v765_v26, 8.507059e+37 }
 0x45a   : > { %v1288_v20 = vpop.eup %1287 }
 0x45b   : > { %v757_v21 = vmul.f32 %v1288_v20, %v755_v19  ;;  %vm762_vm10 = vweird.f32 %v1288_v20 }
 0x45c   : > { %vm763_vm12 = vmor %vm761_vm11, %vm762_vm10 }
 0x45d   : > { %v758_v22 = vsub.f32 1.0, %v757_v21 }
 0x45f   : > { %v759_v23 = vmul.f32 %v1288_v20, %v758_v22 }
 0x461   : > { %v760_v25 = vadd.f32 %v1288_v20, %v759_v23  ;;  %v835_v27 = vpop.xlane.xlu2 %834 }
 0x462   : > { %1289 = vrcp.f32 %v835_v27  ;;  %v847_v35 = vand.u32 2147483648, %v835_v27  ;;  %v845_v37 = vand.u32 2147483647, %v835_v27  ;;  %vm841_vm15 = vweird.f32 %v835_v27 }
 0x463   : > { %v764_v28 = vsel %vm763_vm12, %v1288_v20, %v760_v25  ;;  %1291 = vrcp.f32 %v1443_v61  ;;  %v1000_v20 = vld [vmem:[%s1844_s10 + $0x18] sm:$0xff] }
 0x464   : > { %v769_v30 = vsel %vm766_vm13, %v768_v29, %v764_v28  ;;  %v848_v39 = vor.u32 1.1754944e-38, %v847_v35  ;;  %vm846_vm3 = vcmp.eq.f32.partialorder %v845_v37, 8.507059e+37  ;;  %1025 = vmatpush.msrb.mxu0 %v1000_v20  ;;  %v1271_v35 = vld [vmem:[%s1843_s9] ss:$0 sm:$0xff] }
 0x465   : > { %v770_v33 = vmul.f32 %v1284_v11, %v769_v30  ;;  %v966_v11 = vld [vmem:[%s1842_s8 + $0x8] sm:$0xff]  ;;  %v1270_v30 = vld [vmem:[%s1841_s7] ss:$0 sm:$0xff] }
 0x466   : > { %v879_v49 = vpop.permute.xlu0 %878 }
 0x467   : > { %v889_v51 = vsel %vm557_vm1, %v1702_v60, %v879_v49 }
 0x468   : > { %v1290_v31 = vpop.eup %1289 }
 0x469   : > { %v837_v7 = vmul.f32 %v1290_v31, %v835_v27  ;;  %v772_v32 = vpop.permute.xlu2 %771  ;;  %vm842_vm14 = vweird.f32 %v1290_v31  ;;  %v1292_v62 = vpop.eup %1291  ;;  %v1269_v27 = vld [vmem:[%s1840_s6] ss:$0 sm:$0xff] }
 0x46a   : > { %792 = vmatpush.msrb.mxu3 %v772_v32  ;;  %vm843_vm2 = vmor %vm841_vm15, %vm842_vm14  ;;  %v930_v60 = vmul.f32 32.0, %v1292_v62  ;;  %v999_v32 = vld [vmem:[%s1844_s10 + $0x10] sm:$0xff] }
 0x46b   : > { %v838_v34 = vsub.f32 1.0, %v837_v7  ;;  %1189 = vmatmul.msk.f32.vlgmr.msrb.gmra.mxu3 %vm557_vm1, %v770_v33  ;;  %1026 = vmatpush.msrb.mxu0 %v999_v32  ;;  %v998_v33 = vld [vmem:[%s1844_s10 + $0x8] sm:$0xff] }
 0x46c   : > { %v931_v63 = vsub.f32 1.0, %v930_v60  ;;  %988 = vmatpush.msra.mxu3 %v968_v9 }
 0x46d   : > { %v839_v36 = vmul.f32 %v1290_v31, %v838_v34  ;;  %1027 = vmatpush.msrb.mxu0 %v998_v33  ;;  %v997_v34 = vld [vmem:[%s1844_s10] sm:$0xff] }
 0x46e   : > { %v932_v0 = vmul.f32 %v1292_v62, %v931_v63  ;;  %989 = vmatpush.msra.mxu3 %v967_v10 }
 0x46f   : > { %v840_v38 = vadd.f32 %v1290_v31, %v839_v36  ;;  %1028 = vmatpush.msrb.mxu0 %v997_v34 }
 0x470   : > { %v933_v1 = vadd.f32 %v1292_v62, %v932_v0  ;;  %990 = vmatpush.msra.mxu3 %v966_v11 }
 0x471   : > { %v844_v40 = vsel %vm843_vm2, %v1290_v31, %v840_v38 }
 0x472   : > { %v849_v41 = vsel %vm846_vm3, %v848_v39, %v844_v40  ;;  %991 = vmatpush.msra.mxu3 %v965_v12  ;;  %v1272_v39 = vld [vmem:[%s1845_s11] ss:$0 sm:$0xff] }
 0x473   : > { %v850_v42 = vmul.f32 %v1286_v17, %v849_v41 }
 0x475   : > { %1192 = vmatmul.msk.f32.vlgmr.msrb.gmra.mxu2 %vm557_vm1, %v850_v42  ;;  %vm934_vm1 = vweird.f32 %v1292_v62 }
 0x476   : > { %v1734_v2 = vsel %vm934_vm1, %v1292_v62, %v933_v1  ;;  %v1274_v62 = vld [vmem:[%s1875_s19] ss:$0 sm:$0xff] }
 0x4ee   : > { %v794_v43 = vpop.f32.mrf.mxu3 }
 0x4ef   : > { %882 = vrot.lane.b32.xlu2 %v794_v43, %s1441_s24  ;;  %s1082_s24 = sshll.u32 %s1078_s20, 4  ;;  %s1083_s24 = int_to_ptr.hbm [resolvable:$true] %s1082_s24 }
 0x4f0   : > { %s1371_s25 = sshra.s32 %s1083_s24, 4  ;;  %s1372_s25 = int_to_ptr.hbm [resolvable:$true] %s1371_s25 }
 0x4f1   : > { %s1373_s22 = scalar_lea.hbm %s1372_s25, 8  ;;  %p1378_p10 = scmp.lt.s32.totalorder %s1372_s25, %s1873_s28 }
 0x4f2   : > { %p1374_p6 = scmp.ne.s32.totalorder %s1372_s25, %s1373_s22  ;;  %p1379_p2 = scmp.lt.s32.totalorder %s1377_s18, %s1373_s22 }
 0x4f4   : > { %p1375_p13 = pnand %p1374_p6, %p1569_p11  ;;  %p1380_p9 = por %p1379_p2, %p1378_p10 }
 0x4f6   : > { %p1376_p3 = pneg %p1375_p13 }
 0x4f8   : > { %v874_v44 = vpop.f32.mrf.mxu2  ;;  %p1381_p0 = pnand %p1380_p9, %p1376_p3 }
 0x4f9   : > { %886 = vrot.lane.b32.xlu0 %v874_v44, %s1442_s14  ;;  %s1068_s14 = scalar_lea.sflag [#allocation4], %s1635_s27 }
 0x549   : > { %v883_v50 = vpop.permute.xlu2 %882 }
 0x54a   : > { %v891_v52 = vsel %vm890_vm4, %v889_v51, %v883_v50 }
 0x56b   : > { %v887_v53 = vpop.permute.xlu0 %886 }
 0x56c   : > { %v893_v54 = vsel %vm892_vm5, %v891_v52, %v887_v53 }
 0x56d   : > { %1193 = vmatmul.msk.f32.vlgmr.msra.gmra.mxu1 %vm530_vm0, %v893_v54 }
 0x5ea   : > { %v922_v56 = vpop.f32.mrf.mxu1 }
 0x5eb   : > { %v923_v57 = vadd.f32 %v1268_v55, %v922_v56 }
 0x5ed   : > { %v925_v58 = vadd.f32 %v923_v57, %v1663_v4 }
 0x5ef   : > { %v926_v59 = vsel %vm530_vm0, %v925_v58, 0.0 }
 0x5f0   : > { %927 = vadd.xlane.f32.xlu1 %v926_v59 }
 0x663   : > { %v928_v3 = vpop.xlane.xlu1 %927 }
 0x664   : > { %v936_v5 = vmul.f32 %v1734_v2, %v928_v3 }
 0x666   : > { %v937_v6 = vsub.f32 %v925_v58, %v936_v5  ;;  %v1273_v58 = vld [vmem:[%s1846_s12] ss:$0 sm:$0xff] }
 0x668   : > { %v938_v8 = vmul.f32 %v937_v6, %v937_v6 }
 0x66a   : > { %v939_v4 = vsel %vm530_vm0, %v938_v8, 0.0 }
 0x66b   : > { %940 = vadd.xlane.f32.xlu2 %v939_v4 }
 0x6de   : > { %v941_v17 = vpop.xlane.xlu2 %940 }
 0x6df   : > { %v942_v13 = vmul.f32 %v941_v17, %v1734_v2 }
 0x6e1   : > { %v943_v19 = vadd.f32 1e-05, %v942_v13 }
 0x6e3   : > { %1293 = vrsqrt.f32 %v943_v19  ;;  %vm950_vm7 = vweird.f32 %v943_v19 }
 0x6e9   : > { %v1294_v21 = vpop.eup %1293 }
 0x6ea   : > { %v945_v22 = vmul.f32 %v1294_v21, %v943_v19  ;;  %vm951_vm6 = vweird.f32 %v1294_v21 }
 0x6eb   : > { %vm952_vm8 = vmor %vm950_vm7, %vm951_vm6 }
 0x6ec   : > { %v946_v23 = vmul.f32 %v1294_v21, %v945_v22 }
 0x6ee   : > { %v947_v24 = vmul.f32 0.5, %v946_v23 }
 0x6f0   : > { %v948_v25 = vsub.f32 1.5, %v947_v24 }
 0x6f2   : > { %v949_v26 = vmul.f32 %v1294_v21, %v948_v25 }
 0x6f4   : > { %v953_v28 = vsel %vm952_vm8, %v1294_v21, %v949_v26 }
 0x6f5   : > { %v954_v29 = vmul.f32 %v953_v28, %v937_v6 }
 0x6f7   : > { %v959_v31 = vmul.f32 %v1269_v27, %v954_v29 }
 0x6f9   : > { %v964_v7 = vadd.f32 %v1270_v30, %v959_v31 }
 0x6fb   : > { %1194 = vmatmul.msk.f32.vlgmr.msra.gmra.mxu3 %vm530_vm0, %v964_v7 }
 0x77e   : > { %v993_v36 = vpop.f32.mrf.mxu3 }
 0x77f   : > { %v994_v37 = vadd.f32 %v1271_v35, %v993_v36 }
 0x781   : > { %v996_v38 = vmax.f32 %v994_v37, 0.0 }
 0x783   : > { %1195 = vmatmul.msk.f32.vlgmr.msrb.gmra.mxu0 %vm1009_vm9, %v996_v38 }
 0x800   : > { %v1030_v40 = vpop.f32.mrf.mxu0 }
 0x801   : > { %v1031_v41 = vadd.f32 %v1272_v39, %v1030_v40 }
 0x803   : > { %v1033_v42 = vadd.f32 %v1031_v41, %v964_v7 }
 0x805   : > { %v1034_v43 = vsel %vm530_vm0, %v1033_v42, 0.0 }
 0x806   : > { %1035 = vadd.xlane.f32.xlu0 %v1034_v43 }
 0x879   : > { %v1036_v44 = vpop.xlane.xlu0 %1035 }
 0x87a   : > { %v1037_v45 = vmul.f32 %v1036_v44, %v1734_v2 }
 0x87c   : > { %v1038_v46 = vsub.f32 %v1033_v42, %v1037_v45 }
 0x87e   : > { %v1039_v47 = vmul.f32 %v1038_v46, %v1038_v46 }
 0x880   : > { %v1040_v48 = vsel %vm530_vm0, %v1039_v47, 0.0 }
 0x881   : > { %1041 = vadd.xlane.f32.xlu1 %v1040_v48 }
 0x8f4   : > { %v1042_v49 = vpop.xlane.xlu1 %1041 }
 0x8f5   : > { %v1043_v50 = vmul.f32 %v1042_v49, %v1734_v2 }
 0x8f7   : > { %v1044_v51 = vadd.f32 1e-05, %v1043_v50 }
 0x8f9   : > { %1295 = vrsqrt.f32 %v1044_v51  ;;  %vm1051_vm11 = vweird.f32 %v1044_v51 }
 0x8ff   : > { %v1296_v52 = vpop.eup %1295 }
 0x900   : > { %v1046_v53 = vmul.f32 %v1296_v52, %v1044_v51  ;;  %vm1052_vm10 = vweird.f32 %v1296_v52 }
 0x901   : > { %vm1053_vm12 = vmor %vm1051_vm11, %vm1052_vm10 }
 0x902   : > { %v1047_v54 = vmul.f32 %v1296_v52, %v1046_v53 }
 0x904   : > { %v1048_v55 = vmul.f32 0.5, %v1047_v54 }
 0x906   : > { %v1049_v56 = vsub.f32 1.5, %v1048_v55 }
 0x908   : > { %v1050_v57 = vmul.f32 %v1296_v52, %v1049_v56 }
 0x90a   : > { %v1054_v59 = vsel %vm1053_vm12, %v1296_v52, %v1050_v57 }
 0x90b   : > { %v1055_v61 = vmul.f32 %v1054_v59, %v1038_v46 }
 0x90d   : > { %v1060_v60 = vmul.f32 %v1273_v58, %v1055_v61 }
 0x90f   : > { %v1065_v63 = vadd.f32 %v1274_v62, %v1060_v60 }
 0x911   : > { %1066 = vst.msk [vmem:[%s519_s17] sm:$0xff] %vm530_vm0, %v1065_v63 }
 0x912   : > { %1384 = shalt.err (!%p1381_p0)
}
 0x913   : > { %1204 = dma.vmem_to_hbm [thread:$0]  (%p1569_p11), %s1081_s26, 128, %s1083_s24, %s1068_s14  }
 0x914 PF: > { %s1876_s27 = sld [smem:[#allocation11_spill]]  ;;  %p1878_p1 = scmp.ge.s32.totalorder %s1427_s16, 2 }
 0x916   : > { %p1214_p4 = pnand %p1878_p1, %p1573_p12 }
 0x918   : > { %p1215_p7 = pneg %p1214_p4 }
 0x91a   : > { %s1094_s15 = sand.u32 1, %s1876_s27  }
 0x91b   : > { %s1095_s19 = scalar_lea.sflag [#allocation4], %s1094_s15 }
 0x91c   : > { %1410 = dma.done.wait (%p1215_p7), %s1095_s19, 128  }
 0x91d   : > { %1412 = vsyncadd (%p1215_p7), %s1095_s19, 4294967168  ;;  %s1879_s16 = sld [smem:[#allocation13_spill]]  ;;  %s1882_s29 = smov %s1419_s30 }
 0x91e   : > { %s1880_s17 = sld [smem:[#allocation12_spill]] }
 0x91f   : > { %s1881_s15 = sld [smem:[#allocation14_spill]] }
 0x923   : > { %p30_p5 = scmp.ge.s32.totalorder %s1879_s16, 4  }
 0x924   : > { %s1883_s30 = smov %s1880_s17 }
 0x925   :  { %32 = sbr.rel (!%p30_p5) target bundleno = 11 (0xb), region = 134 }
 0x92a   :  { %1101 = vsyncpa [#allocation3], 1 }
 0x92b   :  { %1103 = vsyncpa [#allocation3 + $0x1], 1 }
 0x92c   :  { %1104 = vsyncpa [#allocation6], 1 }
 0x92d   :  { %1106 = vsyncpa [#allocation6 + $0x1], 1 }
 0x92e   :  { %1107 = vsyncpa [#allocation4], 1 }
 0x92f   :  { %1109 = vsyncpa [#allocation4 + $0x1], 1 }

</bundles_post_ra>
